<compile_context>
chip_gen: v7x
topology: tpu7x:2x2x1
jax: 0.10.0
libtpu: 0.0.40
codegen_flags: <defaults>
</compile_context>

<pallas_src>
import jax
import jax.numpy as jnp
from jax.experimental import pallas as pl
from jax.experimental.pallas import tpu as pltpu

_LANE = 128


def _round8(n):
    return -(-n // 8) * 8


def _round_lane(n):
    return -(-n // _LANE) * _LANE


# ----------------------------------------------------------------------------
# Weight slab packing (done once at init).
# ----------------------------------------------------------------------------
def weight_slab_layout(s_dim, z_dim, hidden):
    """Row offsets (W1f, b1f, W2f, b2f), logvar column offset, slab shape."""
    h2 = 2 * hidden
    col_lv = _round_lane(z_dim)            # logvar block starts on a lane-128 boundary
    out_cols = col_lv + z_dim              # fused second-layer output width
    r_w1 = 0
    r_b1 = r_w1 + _round8(s_dim)
    r_w2 = r_b1 + 8
    r_b2 = r_w2 + _round8(h2)
    nrows = r_b2 + 8
    ncols = max(h2, out_cols)
    return (r_w1, r_b1, r_w2, r_b2), col_lv, out_cols, (nrows, ncols)


def pack_weights(params, s_dim, z_dim, hidden):
    """Fuse the 8 Linear params into one padded, sublane/lane-aligned f32 slab."""
    w1, b1, w2, b2, w3, b3, w4, b4 = params
    h2 = 2 * hidden
    (r_w1, r_b1, r_w2, r_b2), col_lv, out_cols, (nrows, ncols) = \
        weight_slab_layout(s_dim, z_dim, hidden)

    slab = jnp.zeros((nrows, ncols), jnp.float32)
    # First layers fused: [w1 | w3] : [S, 2H],  [b1 | b3] : [1, 2H]
    slab = slab.at[r_w1:r_w1 + s_dim, :hidden].set(w1)
    slab = slab.at[r_w1:r_w1 + s_dim, hidden:h2].set(w3)
    slab = slab.at[r_b1, :hidden].set(b1[0])
    slab = slab.at[r_b1, hidden:h2].set(b3[0])
    # Second layers fused block-diagonal, logvar block lane-aligned at col_lv:
    #   rows [0:H)   -> w2 into cols [0:Z)
    #   rows [H:2H)  -> w4 into cols [col_lv:col_lv+Z)
    slab = slab.at[r_w2:r_w2 + hidden, :z_dim].set(w2)
    slab = slab.at[r_w2 + hidden:r_w2 + h2, col_lv:col_lv + z_dim].set(w4)
    slab = slab.at[r_b2, :z_dim].set(b2[0])
    slab = slab.at[r_b2, col_lv:col_lv + z_dim].set(b4[0])
    return slab


# ----------------------------------------------------------------------------
# Data slab packing (per call): s, z, one-hot permutation.
# ----------------------------------------------------------------------------
def data_slab_layout(batch, s_dim, z_dim):
    rb = _round8(batch)
    r_s, r_z, r_p = 0, rb, 2 * rb
    nrows = 3 * rb
    ncols = max(s_dim, z_dim, batch)
    return (r_s, r_z, r_p), (nrows, ncols)


def pack_data(s_prime, z_prime, perm, s_dim, z_dim):
    batch = s_prime.shape[0]
    (r_s, r_z, r_p), (nrows, ncols) = data_slab_layout(batch, s_dim, z_dim)
    p_onehot = jax.nn.one_hot(perm, batch, dtype=jnp.float32)   # zs = P @ z
    slab = jnp.zeros((nrows, ncols), jnp.float32)
    slab = slab.at[r_s:r_s + batch, :s_dim].set(s_prime)
    slab = slab.at[r_z:r_z + batch, :z_dim].set(z_prime)
    slab = slab.at[r_p:r_p + batch, :batch].set(p_onehot)
    return slab


# ----------------------------------------------------------------------------
# Kernel.
# ----------------------------------------------------------------------------
def make_club_kernel(batch, s_dim, z_dim, hidden):
    h2 = 2 * hidden
    (r_w1, r_b1, r_w2, r_b2), col_lv, out_cols, _ = \
        weight_slab_layout(s_dim, z_dim, hidden)
    (r_s, r_z, r_p), _ = data_slab_layout(batch, s_dim, z_dim)
    inv_n = 1.0 / float(batch * z_dim)

    def kernel(d_ref, w_ref, out_ref):
        # Static slices -> zero-cost ref views.
        s = d_ref[r_s:r_s + batch, :s_dim]                        # [B, S]
        z = d_ref[r_z:r_z + batch, :z_dim]                        # [B, Z]
        p = d_ref[r_p:r_p + batch, :batch]                        # [B, B] one-hot

        w1 = w_ref[r_w1:r_w1 + s_dim, :h2]                        # [S, 2H]
        b1 = w_ref[r_b1:r_b1 + 1, :h2]                            # [1, 2H]
        w2 = w_ref[r_w2:r_w2 + h2, :out_cols]                     # [2H, col_lv+Z]
        b2 = w_ref[r_b2:r_b2 + 1, :out_cols]                      # [1, col_lv+Z]

        # Fused p_mu / p_logvar: Linear -> ReLU -> Linear -> Tanh in 2 MXU ops.
        h = jnp.dot(s, w1, preferred_element_type=jnp.float32) + b1
        h = jnp.maximum(h, 0.0)                                   # [B, 2H]
        y = jnp.tanh(jnp.dot(h, w2, preferred_element_type=jnp.float32) + b2)

        mu = y[:, :z_dim]                                         # lane-aligned slice
        logvar = y[:, col_lv:col_lv + z_dim]                      # lane-aligned slice
        inv_var = jnp.exp(-logvar)

        # Batch shuffle as a one-hot permutation matmul on the idle MXU.
        zs = jnp.dot(p, z, preferred_element_type=jnp.float32)    # [B, Z]

        # -0.5*logvar cancels exactly between positive and negative log-liks.
        delta = (z - mu) ** 2 - (zs - mu) ** 2
        out_ref[0, 0] = jnp.sum(-0.5 * inv_var * delta) * inv_n

    return kernel


# ----------------------------------------------------------------------------
# Wrapper.
# ----------------------------------------------------------------------------
def club_forward(s_prime, z_prime, w_slab, perm, s_dim, z_dim, hidden):
    """Returns the scalar CLUB MI upper-bound estimate (E[log q(z|s)] - E[log q(z)])."""
    batch = s_prime.shape[0]
    d_slab = pack_data(s_prime, z_prime, perm, s_dim, z_dim)
    kernel = make_club_kernel(batch, s_dim, z_dim, hidden)

    h2 = 2 * hidden
    _, _, out_cols, _ = weight_slab_layout(s_dim, z_dim, hidden)
    flops = 2 * batch * (s_dim * h2 + h2 * out_cols + batch * z_dim) + 8 * batch * z_dim
    transcendentals = batch * (out_cols + z_dim)                  # tanh + exp
    bytes_accessed = 4 * (d_slab.size + w_slab.size) + 4

    vmem = pl.BlockSpec(memory_space=pltpu.MemorySpace.VMEM)
    smem = pl.BlockSpec(memory_space=pltpu.MemorySpace.SMEM)

    out = pl.pallas_call(
        kernel,
        out_shape=jax.ShapeDtypeStruct((1, 1), jnp.float32),
        in_specs=[vmem, vmem],
        out_specs=smem,
        cost_estimate=pl.CostEstimate(
            flops=flops,
            transcendentals=transcendentals,
            bytes_accessed=bytes_accessed),
    )(d_slab, w_slab)
    return out[0, 0]


# ----------------------------------------------------------------------------
# Init + reference + test.
# ----------------------------------------------------------------------------
def init_linear(key, fan_in, fan_out):
    """Deterministic PyTorch-style uniform(-1/sqrt(fan_in), 1/sqrt(fan_in)) init."""
    kw, kb = jax.random.split(key)
    bound = 1.0 / jnp.sqrt(jnp.float32(fan_in))
    w = jax.random.uniform(kw, (fan_in, fan_out), jnp.float32, -bound, bound)
    b = jax.random.uniform(kb, (1, fan_out), jnp.float32, -bound, bound)
    return w, b


def reference_forward(s_prime, z_prime, params, perm):
    (w1, b1, w2, b2, w3, b3, w4, b4) = params
    mu = jnp.tanh(jnp.maximum(s_prime @ w1 + b1, 0.0) @ w2 + b2)
    logvar = jnp.tanh(jnp.maximum(s_prime @ w3 + b3, 0.0) @ w4 + b4)
    zs = z_prime[perm]
    pos = (-0.5 * (z_prime - mu) ** 2 / jnp.exp(logvar) - 0.5 * logvar).mean()
    neg = (-0.5 * (zs - mu) ** 2 / jnp.exp(logvar) - 0.5 * logvar).mean()
    return pos - neg


if __name__ == "__main__":
    B, S_DIM, Z_DIM, HIDDEN = 8, 16, 16, 32

    root = jax.random.PRNGKey(0)
    k_s, k_z, k_perm, k1, k2, k3, k4 = jax.random.split(root, 7)

    s_prime = jax.random.normal(k_s, (B, S_DIM), jnp.float32)
    z_prime = jax.random.normal(k_z, (B, Z_DIM), jnp.float32)

    # Deterministic stand-in for torch.randperm(B); consumed as a one-hot matmul.
    perm = jax.random.permutation(k_perm, B).astype(jnp.int32)
    # Guard against silent garbage: perm must be a true permutation of [0, B).
    assert sorted(int(i) for i in perm) == list(range(B)), "perm is not a permutation"

    w1, b1 = init_linear(k1, S_DIM, HIDDEN)   # p_mu layer 1
    w2, b2 = init_linear(k2, HIDDEN, Z_DIM)   # p_mu layer 2
    w3, b3 = init_linear(k3, S_DIM, HIDDEN)   # p_logvar layer 1
    w4, b4 = init_linear(k4, HIDDEN, Z_DIM)   # p_logvar layer 2
    params = (w1, b1, w2, b2, w3, b3, w4, b4)

    # Done once at init: fuse + pack all weights/biases into a single slab.
    w_slab = pack_weights(params, S_DIM, Z_DIM, HIDDEN)

    mi_est = jax.block_until_ready(
        club_forward(s_prime, z_prime, w_slab, perm, S_DIM, Z_DIM, HIDDEN))
    ref = jax.block_until_ready(reference_forward(s_prime, z_prime, params, perm))

    assert jnp.allclose(mi_est, ref, atol=1e-5, rtol=1e-5), (mi_est, ref)
    print("KERNEL_OK")
</pallas_src>

<mosaic_0001>
module attributes {stable_mosaic.version = 11 : i64} {
  func.func @kernel(%arg0: memref<24x16xf32, #tpu.memory_space<vmem>>, %arg1: memref<96x144xf32, #tpu.memory_space<vmem>>, %arg2: memref<1x1xf32, #tpu.memory_space<smem>>) attributes {dimension_semantics = [], scalar_prefetch = 0 : i64, scratch_operands = 0 : i64, tpu.core_type = #tpu.core_type<tc>} {
    %c0 = arith.constant 0 : index
    %c0_0 = arith.constant 0 : index
    %0 = vector.load %arg0[%c0, %c0_0] : memref<24x16xf32, #tpu.memory_space<vmem>>, vector<8x16xf32>
    %c8 = arith.constant 8 : index
    %c0_1 = arith.constant 0 : index
    %1 = vector.load %arg0[%c8, %c0_1] : memref<24x16xf32, #tpu.memory_space<vmem>>, vector<8x16xf32>
    %c16 = arith.constant 16 : index
    %c0_2 = arith.constant 0 : index
    %2 = vector.load %arg0[%c16, %c0_2] : memref<24x16xf32, #tpu.memory_space<vmem>>, vector<8x8xf32>
    %c0_3 = arith.constant 0 : index
    %c0_4 = arith.constant 0 : index
    %3 = vector.load %arg1[%c0_3, %c0_4] : memref<96x144xf32, #tpu.memory_space<vmem>>, vector<16x64xf32>
    %c16_5 = arith.constant 16 : index
    %c0_6 = arith.constant 0 : index
    %4 = vector.load %arg1[%c16_5, %c0_6] : memref<96x144xf32, #tpu.memory_space<vmem>>, vector<1x64xf32>
    %c24 = arith.constant 24 : index
    %c0_7 = arith.constant 0 : index
    %5 = vector.load %arg1[%c24, %c0_7] : memref<96x144xf32, #tpu.memory_space<vmem>>, vector<64x144xf32>
    %c88 = arith.constant 88 : index
    %c0_8 = arith.constant 0 : index
    %6 = vector.load %arg1[%c88, %c0_8] : memref<96x144xf32, #tpu.memory_space<vmem>>, vector<1x144xf32>
    %cst = arith.constant dense<0.000000e+00> : vector<8x64xf32>
    %7 = tpu.matmul %0, %3, %cst {dimension_numbers = #tpu.dot_dimension_numbers<[1], [0], [0], [1], [0, 0, 1, 1], [], []>} : vector<8x16xf32>, vector<16x64xf32>, vector<8x64xf32> -> vector<8x64xf32>
    %8 = vector.broadcast %4 : vector<1x64xf32> to vector<8x64xf32>
    %9 = arith.addf %7, %8 : vector<8x64xf32>
    %cst_9 = arith.constant 0.000000e+00 : f32
    %10 = vector.broadcast %cst_9 : f32 to vector<8x64xf32>
    %11 = arith.maximumf %9, %10 : vector<8x64xf32>
    %cst_10 = arith.constant dense<0.000000e+00> : vector<8x144xf32>
    %12 = tpu.matmul %11, %5, %cst_10 {dimension_numbers = #tpu.dot_dimension_numbers<[1], [0], [0], [1], [0, 0, 1, 1], [], []>} : vector<8x64xf32>, vector<64x144xf32>, vector<8x144xf32> -> vector<8x144xf32>
    %13 = vector.broadcast %6 : vector<1x144xf32> to vector<8x144xf32>
    %14 = arith.addf %12, %13 : vector<8x144xf32>
    %15 = math.tanh %14 : vector<8x144xf32>
    %16 = vector.extract_strided_slice %15 {offsets = [0, 0], sizes = [8, 16], strides = [1, 1]} : vector<8x144xf32> to vector<8x16xf32>
    %17 = vector.extract_strided_slice %15 {offsets = [0, 128], sizes = [8, 16], strides = [1, 1]} : vector<8x144xf32> to vector<8x16xf32>
    %cst_11 = arith.constant 0.000000e+00 : f32
    %18 = vector.broadcast %cst_11 : f32 to vector<8x16xf32>
    %19 = arith.subf %18, %17 : vector<8x16xf32>
    %20 = math.exp %19 : vector<8x16xf32>
    %cst_12 = arith.constant dense<0.000000e+00> : vector<8x16xf32>
    %21 = tpu.matmul %2, %1, %cst_12 {dimension_numbers = #tpu.dot_dimension_numbers<[1], [0], [0], [1], [0, 0, 1, 1], [], []>} : vector<8x8xf32>, vector<8x16xf32>, vector<8x16xf32> -> vector<8x16xf32>
    %22 = arith.subf %1, %16 : vector<8x16xf32>
    %23 = arith.mulf %22, %22 : vector<8x16xf32>
    %24 = arith.subf %21, %16 : vector<8x16xf32>
    %25 = arith.mulf %24, %24 : vector<8x16xf32>
    %26 = arith.subf %23, %25 : vector<8x16xf32>
    %cst_13 = arith.constant -5.000000e-01 : f32
    %27 = vector.broadcast %cst_13 : f32 to vector<8x16xf32>
    %28 = arith.mulf %27, %20 : vector<8x16xf32>
    %29 = arith.mulf %28, %26 : vector<8x16xf32>
    %30 = vector.shape_cast %29 : vector<8x16xf32> to vector<1x8x16xf32>
    %cst_14 = arith.constant dense<0.000000e+00> : vector<1xf32>
    %31 = vector.multi_reduction <add>, %30, %cst_14 [1, 2] : vector<1x8x16xf32> to vector<1xf32>
    %32 = vector.shape_cast %31 : vector<1xf32> to vector<1x1x1xf32>
    %33 = vector.extract %32[0, 0, 0] : f32 from vector<1x1x1xf32>
    %cst_15 = arith.constant 7.812500e-03 : f32
    %34 = arith.mulf %33, %cst_15 : f32
    %c0_16 = arith.constant 0 : index
    %c0_17 = arith.constant 0 : index
    %35 = memref.load %arg2[%c0_16, %c0_17] : memref<1x1xf32, #tpu.memory_space<smem>>
    memref.store %34, %arg2[%c0_16, %c0_17] : memref<1x1xf32, #tpu.memory_space<smem>>
    return
  }
}

</mosaic_0001>

<bundles_post_ra>
// kernel: tpu_custom_call.1
= control target key start
LH: loop header
LB: loop body
LE: loop exit
PB: predicated region body
PF: predicated region fallthrough
CT: control target
= control target key end

     0   :  { %v373_v2 = vmov 0.0|0.0   ;;  %vm374_vm0 = vmmov 0   ;;  %v375_v4 = vmov 0.0   ;;  %vm36_vm1 = vcmask 130048   ;;  %s477_s0 = inlined_call_operand.vmem [shape: f32[24,16], index: 0, kind: input, shape index: {}]   ;;  %s478_s1 = inlined_call_operand.vmem [shape: f32[96,144], index: 1, kind: input, shape index: {}]   ;;  %s479_s2 = inlined_call_operand.hbm [shape: f32[1,1], index: 2, kind: output, shape index: {}]  }
   0x1   :  { %v15_v0 = vld [vmem:[%s478_s1] sm:$0xff]  ;;  %v16_v1 = vld [vmem:[%s478_s1 + $0x10] sm:$0xff]  ;;  %330 = vmatprep.subr.bf16.mxu0 %v373_v2  ;;  %322 = vmatprep.mubr.msk.f32.mxu0 %vm374_vm0, %v375_v4  ;;  %v19_v6 = vld [vmem:[%s478_s1 + $0x38] sm:$0xff] }
   0x2   :  { %v331_v3 = vpack.c.bf16 %v16_v1, %v15_v0  ;;  %v12_v5 = vld [vmem:[%s477_s0] sm:$0xff]  ;;  %v21_v7 = vld [vmem:[%s478_s1 + $0x48] sm:$0xff]  ;;  %v18_v8 = vld [vmem:[%s478_s1 + $0x30] sm:$0xff]  ;;  %190 = vmatprep.mubr.f32.mxu1 %v375_v4 }
   0x3   :  { %v333_v9 = vpack.c.bf16 %v21_v7, %v19_v6  ;;  %v20_v10 = vld [vmem:[%s478_s1 + $0x40] sm:$0xff]  ;;  %v23_v11 = vld [vmem:[%s478_s1 + $0x58] sm:$0xff]  ;;  %v25_v12 = vld [vmem:[%s478_s1 + $0x68] sm:$0xff] }
   0x4   :  { %332 = vmatpush3.bf16.msra.mxu0 %v331_v3  ;;  %v335_v13 = vpack.c.bf16 %v20_v10, %v18_v8  ;;  %v337_v14 = vpack.c.bf16 %v25_v12, %v23_v11  ;;  %v22_v15 = vld [vmem:[%s478_s1 + $0x50] sm:$0xff]  ;;  %v24_v16 = vld [vmem:[%s478_s1 + $0x60] sm:$0xff]  ;;  %v27_v17 = vld [vmem:[%s478_s1 + $0x78] sm:$0xff] }
   0x5   :  { %334 = vmatprep.subr.bf16.mxu1 %v333_v9  ;;  %v29_v18 = vld [vmem:[%s478_s1 + $0x88] sm:$0xff]  ;;  %325 = vmatprep.subr.mxu0 %v375_v4  ;;  %v339_v19 = vpack.c.bf16 %v24_v16, %v22_v15 }
   0x6   :  { %336 = vmatpush1.bf16.msra.mxu1 %v335_v13 }
   0x7   :  { %7 = vsyncpa [#allocation3], 0  ;;  %323 = vmatmul.mubr.msk.f32.vlgmr.msra.gmra.mrb[0].mxu0 %vm36_vm1, %v12_v5  ;;  %338 = vmatprep.subr.bf16.mxu1 %v337_v14  ;;  %v341_v20 = vpack.c.bf16 %v29_v18, %v27_v17  ;;  %v26_v21 = vld [vmem:[%s478_s1 + $0x70] sm:$0xff]  ;;  %v28_v22 = vld [vmem:[%s478_s1 + $0x80] sm:$0xff]  ;;  %vm202_vm2 = vcmask 64512   ;;  %vm122_vm3 = vcmask 523264   ;;  %v112_v39 = vlaneseq }
   0x8   :  { %327 = vmatprep.mubr.msk.f32.mxu0 %vm374_vm0, %v375_v4  ;;  %v343_v23 = vpack.c.bf16 %v28_v22, %v26_v21  ;;  %v31_v24 = vld [vmem:[%s478_s1 + $0x98] sm:$0xff]  ;;  %v33_v25 = vld [vmem:[%s478_s1 + $0xa8] sm:$0xff]  ;;  %v30_v27 = vld [vmem:[%s478_s1 + $0x90] sm:$0xff]  ;;  %s361_s29 = scalar_lea.hbm %s479_s2, 16 }
   0x9   :  { %v345_v26 = vpack.c.bf16 %v33_v25, %v31_v24  ;;  %v32_v28 = vld [vmem:[%s478_s1 + $0xa0] sm:$0xff]  ;;  %v13_v30 = vld [vmem:[%s477_s0 + $0x8] sm:$0xff]  ;;  %v14_v31 = vld [vmem:[%s477_s0 + $0x10] sm:$0xff]  ;;  %v113_v40 = vshrl.u32 %v112_v39, 7  ;;  %p362_p0 = scmp.ne.s32.totalorder %s479_s2, %s361_s29  ;;  %p365_p1 = scmp.lt.u32.totalorder %s361_s29, %s479_s2 }
   0xa   :  { %340 = vmatpush1.bf16.msra.mxu1 %v339_v19  ;;  %v347_v29 = vpack.c.bf16 %v32_v28, %v30_v27  ;;  %326 = vmatpush3.msra.mxu0 %v13_v30  ;;  %v17_v32 = vld [vmem:[%s478_s1 + $0x20] ss:$0 sm:$0xff]  ;;  %v309_v42 = vld [vmem:[%s478_s1 + $0xb0] ss:$8 sm:$0x3] }
   0xb   :  { %342 = vmatprep.subr.bf16.mxu1 %v341_v20  ;;  %328 = vmatmul.mubr.msk.f32.vlgmr.msra.gmra.mrb[2].mxu0 %vm202_vm2, %v14_v31  ;;  %v114_v41 = vsub.s32 0, %v113_v40  ;;  %v118_v43 = vsub.s32 1, %v113_v40  ;;  %p367_p2 = pnand %p365_p1, %p362_p0 }
   0xd   :  { %v115_v44 = vrot.slane %v309_v42, %v114_v41  ;;  %v119_v45 = vrot.slane %v309_v42, %v118_v43 }
   0xe   :  { %344 = vmatpush1.bf16.msra.mxu1 %v343_v23 }
   0xf   :  { %346 = vmatprep.subr.bf16.mxu1 %v345_v26 }
  0x12   :  { %348 = vmatpush1.bf16.msra.mxu1 %v347_v29 }
  0xda   :  { %v106_v33 = vpop.f32.mrb[0].mxu0 }
  0xdb   :  { %v107_v34 = vadd.f32 %v106_v33, %v17_v32  ;;  %v324_v35 = vpop.f32.mrb[1].mxu0 }
  0xdd   :  { %v110_v36 = vmax.f32 %v107_v34, 0.0 }
  0xde   :  { %v272_v37 = vpop.f32.mrb[2].mxu0 }
  0xdf   :  { %311 = vmatmul.mubr.msk.f32.vlgmr.msra.gmra.mrb[0].mxu1 %vm122_vm3, %v110_v36  ;;  %v329_v38 = vpop.f32.mrb[3].mxu0 }
 0x1b2   :  { %v192_v46 = vpop.f32.mrb[0].mxu1 }
 0x1b3   :  { %v193_v47 = vadd.f32 %v192_v46, %v115_v44  ;;  %v194_v48 = vpop.f32.mrb[1].mxu1 }
 0x1b4   :  { %v195_v49 = vadd.f32 %v194_v48, %v119_v45 }
 0x1b5   :  { %355 = vtanh.f32 %v193_v47 }
 0x1b6   :  { %357 = vtanh.f32 %v195_v49 }
 0x1bf   :  { %v356_v50 = vpop.eup %355 }
 0x1c0   :  { %v358_v51 = vpop.eup %357  ;;  %v276_v52 = vsub.f32 %v13_v30, %v356_v50  ;;  %v278_v53 = vsub.f32 %v272_v37, %v356_v50 }
 0x1c1   :  { %v199_v54 = vsub.f32 0.0, %v358_v51 }
 0x1c2   :  { %v277_v55 = vmul.f32 %v276_v52, %v276_v52  ;;  %v279_v56 = vmul.f32 %v278_v53, %v278_v53 }
 0x1c3   :  { %v200_v57 = vmul.f32 1.442695, %v199_v54 }
 0x1c4   :  { %v280_v58 = vsub.f32 %v277_v55, %v279_v56 }
 0x1c5   :  { %359 = vpow2.f32 %v200_v57 }
 0x1cf   :  { %v360_v59 = vpop.eup %359 }
 0x1d0   :  { %v281_v60 = vmul.f32 -0.5, %v360_v59 }
 0x1d2   :  { %v282_v61 = vmul.f32 %v281_v60, %v280_v58 }
 0x1d4   :  { %v283_v62 = vsel %vm36_vm1, %v282_v61, 0.0 }
 0x1d5   :  { %284 = vadd.xlane.f32.xlu0 %v283_v62 }
 0x262   :  { %v285_v63 = vpop.xlane.xlu0 %284 }
 0x263   :  { %v286_v0 = vrot.slane %v285_v63, 4 }
 0x265   :  { %v287_v1 = vadd.f32 %v286_v0, %v285_v63 }
 0x267   :  { %v288_v2 = vrot.slane %v287_v1, 2 }
 0x269   :  { %v289_v3 = vadd.f32 %v288_v2, %v287_v1 }
 0x26b   :  { %v290_v4 = vrot.slane %v289_v3, 1 }
 0x26d   :  { %v291_v5 = vadd.f32 %v290_v4, %v289_v3 }
 0x26f   :  { %349 = vpush %v291_v5 }
 0x2a0   :  { %s350_s1 = spop %349 }
 0x2a1   :  { %s293_s26 = smul.f32 0.0078125, %s350_s1 }
 0x2a3   :  { %295 = sst [smem:[#allocation2]] %s293_s26 }
 0x2a4   :  { %370 = shalt.err (!%p367_p2)
}
 0x2a5   :  { %s376_s6 = smov [#allocation2]  }
 0x2a6   :  { %303 = dma.smem_to_hbm %s376_s6, 16, %s479_s2, [#allocation3]  }
 0x2a7   :  { %371 = dma.done.wait [#allocation3], 16  }
 0x2a8   :  { %372 = vsyncadd [#allocation3], 4294967280 }
 0x2a9   :  { %307 = sfence }
 0x2aa   :  { %308 = vsyncpa [#allocation3], 1 }

</bundles_post_ra>
